<compile_context>
chip_gen: v7x
topology: tpu7x:2x2x1
jax: 0.10.0
libtpu: 0.0.40
codegen_flags: <defaults>
</compile_context>

<pallas_src>
import functools

import jax
import jax.numpy as jnp
from jax.experimental import pallas as pl
from jax.experimental.pallas import tpu as pltpu

# ----- small synthetic BERT hyper-parameters -----
B = 2          # batch
S = 8          # sequence length
H = 32         # hidden size ("feat_dim")
NH = 2         # attention heads
DH = H // NH   # head dim
FF = 64        # intermediate (FFN) size
VOCAB = 100
TYPES = 2
MAXPOS = 16
LAYERS = 2
NB_CLASS = 1
LN_EPS = 1e-12


# ---------------- fused encoder kernel ----------------

def _encoder_kernel(emb_ref, bias_ref, emb_g_ref, emb_b_ref,
                    wqkv_ref, bqkv_ref, wo_ref, bo_ref,
                    ln1g_ref, ln1b_ref, w1_ref, b1_ref, w2_ref, b2_ref,
                    ln2g_ref, ln2b_ref,
                    out_ref, x_sc):
    """One grid step == one encoder layer; x carried in VMEM scratch x_sc."""

    def ln(h, g, b):
        mu = jnp.mean(h, axis=-1, keepdims=True)
        var = jnp.mean(jnp.square(h - mu), axis=-1, keepdims=True)
        return (h - mu) * jax.lax.rsqrt(var + LN_EPS) * g + b

    def mm(a, w):
        # bf16 inputs to the MXU, f32 accumulation.
        return jnp.dot(a.astype(jnp.bfloat16), w,
                       preferred_element_type=jnp.float32)

    # ---- embedding LayerNorm, only at the first grid step (no zeros residual) ----
    @pl.when(pl.program_id(0) == 0)
    def _():
        x_sc[...] = ln(emb_ref[...], emb_g_ref[...], emb_b_ref[...])

    x = x_sc[...]                                            # [B*S, H] f32

    # ---- self-attention: fused QKV projection, all batches & heads at once ----
    qkv = mm(x, wqkv_ref[0]) + bqkv_ref[0]                   # [B*S, 3H] f32
    bias = bias_ref[...]                                     # [B*S, B*S] additive mask
    scale = jnp.float32(1.0 / float(DH) ** 0.5)

    ctx_heads = []
    for h in range(NH):                                      # NH=2, unrolled
        qh = qkv[:, h * DH:(h + 1) * DH].astype(jnp.bfloat16)
        kh = qkv[:, H + h * DH:H + (h + 1) * DH].astype(jnp.bfloat16)
        vh = qkv[:, 2 * H + h * DH:2 * H + (h + 1) * DH].astype(jnp.bfloat16)
        # q @ k^T via dot_general (contract last dims of both) -> [B*S, B*S]
        s = jax.lax.dot_general(qh, kh, (((1,), (1,)), ((), ())),
                                preferred_element_type=jnp.float32)
        s = s * scale + bias
        s = s - jnp.max(s, axis=-1, keepdims=True)
        p = jnp.exp(s)
        p = p * pl.reciprocal(jnp.sum(p, axis=-1, keepdims=True), approx=True)
        ctx_heads.append(jnp.dot(p.astype(jnp.bfloat16), vh,
                                 preferred_element_type=jnp.float32))
    ctx = jnp.concatenate(ctx_heads, axis=-1)                # [B*S, H] f32

    attn_out = mm(ctx, wo_ref[0]) + bo_ref[0]
    x = ln(attn_out + x, ln1g_ref[0], ln1b_ref[0])

    # ---- feed-forward ----
    h1 = mm(x, w1_ref[0]) + b1_ref[0]                        # [B*S, FF] f32
    # TODO(synk): HF BERT default is exact erf-GELU; tanh approximation used here.
    c = jnp.float32(0.7978845608028654)                      # sqrt(2/pi)
    h1 = 0.5 * h1 * (1.0 + jnp.tanh(c * (h1 + 0.044715 * h1 * h1 * h1)))
    ffn = mm(h1, w2_ref[0]) + b2_ref[0]
    x = ln(ffn + x, ln2g_ref[0], ln2b_ref[0])

    x_sc[...] = x                                            # carry to next layer

    @pl.when(pl.program_id(0) == pl.num_programs(0) - 1)
    def _():
        out_ref[...] = x                                     # single final store


def encoder(params, emb, bias):
    """emb: [B*S, H] f32, bias: [B*S, B*S] f32 additive mask -> [B*S, H] f32."""
    M = emb.shape[0]
    const2 = lambda l: (0, 0)          # inputs shared by every layer
    per_layer = lambda l: (l, 0, 0)    # per-layer stacked weights

    grid_spec = pltpu.PrefetchScalarGridSpec(
        num_scalar_prefetch=0,
        grid=(LAYERS,),
        in_specs=[
            pl.BlockSpec((M, H), const2),              # emb
            pl.BlockSpec((M, M), const2),              # attention bias
            pl.BlockSpec((1, H), const2),              # emb_ln_g
            pl.BlockSpec((1, H), const2),              # emb_ln_b
            pl.BlockSpec((1, H, 3 * H), per_layer),    # wqkv (bf16)
            pl.BlockSpec((1, 1, 3 * H), per_layer),    # bqkv
            pl.BlockSpec((1, H, H), per_layer),        # wo (bf16)
            pl.BlockSpec((1, 1, H), per_layer),        # bo
            pl.BlockSpec((1, 1, H), per_layer),        # ln1_g
            pl.BlockSpec((1, 1, H), per_layer),        # ln1_b
            pl.BlockSpec((1, H, FF), per_layer),       # w1 (bf16)
            pl.BlockSpec((1, 1, FF), per_layer),       # b1
            pl.BlockSpec((1, FF, H), per_layer),       # w2 (bf16)
            pl.BlockSpec((1, 1, H), per_layer),        # b2
            pl.BlockSpec((1, 1, H), per_layer),        # ln2_g
            pl.BlockSpec((1, 1, H), per_layer),        # ln2_b
        ],
        out_specs=pl.BlockSpec((M, H), const2),
        scratch_shapes=[pltpu.VMEM((M, H), jnp.float32)],
    )
    return pl.pallas_call(
        _encoder_kernel,
        out_shape=jax.ShapeDtypeStruct((M, H), jnp.float32),
        grid_spec=grid_spec,
        compiler_params=pltpu.CompilerParams(
            dimension_semantics=("arbitrary",)),   # sequential carry over layers
    )(emb, bias,
      params["emb_ln_g"], params["emb_ln_b"],
      params["wqkv"], params["bqkv"], params["wo"], params["bo"],
      params["ln1_g"], params["ln1_b"], params["w1"], params["b1"],
      params["w2"], params["b2"], params["ln2_g"], params["ln2_b"])


# ---------------- parameters (deterministic synthetic init) ----------------
# Pretrained 'bert-base-uncased' weights cannot be loaded; shapes/semantics follow HF BERT.

def init_params(key):
    def normal(k, shape, dtype=jnp.float32):
        return (0.02 * jax.random.normal(k, shape, dtype=jnp.float32)).astype(dtype)

    keys = iter(jax.random.split(key, 16))
    L = LAYERS
    return {
        "word_emb": normal(next(keys), (VOCAB, H)),
        "pos_emb": normal(next(keys), (MAXPOS, H)),
        "type_emb": normal(next(keys), (TYPES, H)),
        "emb_ln_g": jnp.ones((1, H), jnp.float32),
        "emb_ln_b": jnp.zeros((1, H), jnp.float32),
        # per-layer weights stacked along a leading layer axis; Q|K|V fused.
        "wqkv": normal(next(keys), (L, H, 3 * H), jnp.bfloat16),
        "bqkv": jnp.zeros((L, 1, 3 * H), jnp.float32),
        "wo": normal(next(keys), (L, H, H), jnp.bfloat16),
        "bo": jnp.zeros((L, 1, H), jnp.float32),
        "ln1_g": jnp.ones((L, 1, H), jnp.float32),
        "ln1_b": jnp.zeros((L, 1, H), jnp.float32),
        "w1": normal(next(keys), (L, H, FF), jnp.bfloat16),
        "b1": jnp.zeros((L, 1, FF), jnp.float32),
        "w2": normal(next(keys), (L, FF, H), jnp.bfloat16),
        "b2": jnp.zeros((L, 1, H), jnp.float32),
        "ln2_g": jnp.ones((L, 1, H), jnp.float32),
        "ln2_b": jnp.zeros((L, 1, H), jnp.float32),
        "pool_w": normal(next(keys), (H, H)),
        "pool_b": jnp.zeros((H,), jnp.float32),
        "cls_w": normal(next(keys), (H, NB_CLASS)),
        "cls_b": jnp.zeros((NB_CLASS,), jnp.float32),
    }


# ---------------- forward (mirrors BertClassifier.forward) ----------------

@jax.jit
def bert_classifier_forward(params, input_ids, attention_mask, token_type_ids):
    Bq, Sq = input_ids.shape
    pos_ids = jnp.arange(Sq)
    emb = (params["word_emb"][input_ids]
           + params["pos_emb"][pos_ids][None, :, :]
           + params["type_emb"][token_type_ids]).reshape(Bq * Sq, H)   # [B*S, H]

    # Fused additive attention bias over the flattened token axis:
    # block-diagonal batch separation + key-padding mask, shared by every head/layer.
    batch_ids = jnp.repeat(jnp.arange(Bq), Sq)                          # [B*S]
    same_batch = batch_ids[:, None] == batch_ids[None, :]
    key_valid = (attention_mask.reshape(Bq * Sq) > 0)[None, :]
    bias = jnp.where(same_batch & key_valid, 0.0, -1e9).astype(jnp.float32)

    x = encoder(params, emb, bias)                                      # [B*S, H]

    # Pooler + classifier + Softmax(dim=0): tiny tail kept in plain JAX
    # (avoids a lane-narrow [B, 1] standalone kernel output).
    cls_tok = x.reshape(Bq, Sq, H)[:, 0, :]                             # [B, H] (CLS)
    pooled = jnp.tanh(cls_tok @ params["pool_w"] + params["pool_b"])    # pooler_output
    logits = pooled @ params["cls_w"] + params["cls_b"]                 # [B, NB_CLASS]
    return jax.nn.softmax(logits, axis=0)                               # nn.Softmax(dim=0)


if __name__ == "__main__":
    key = jax.random.PRNGKey(0)
    pkey, ikey = jax.random.split(key)
    params = init_params(pkey)

    input_ids = jax.random.randint(ikey, (B, S), 0, VOCAB, dtype=jnp.int32)
    input_ids = input_ids.at[:, 0].set(0)                              # pretend token 0 is [CLS]
    attention_mask = jnp.ones((B, S), jnp.int32).at[1, -2:].set(0)     # pad example 1
    token_type_ids = jnp.zeros((B, S), jnp.int32).at[:, S // 2:].set(1)

    out = bert_classifier_forward(params, input_ids, attention_mask, token_type_ids)
    out = jax.block_until_ready(out)

    assert out.shape == (B, NB_CLASS), out.shape
    assert bool(jnp.all(jnp.isfinite(out)))
    # softmax over dim=0 -> columns sum to 1
    assert bool(jnp.allclose(jnp.sum(out, axis=0), 1.0, atol=1e-5))
    print("KERNEL_OK")
</pallas_src>

<mosaic_0001>
module attributes {stable_mosaic.version = 11 : i64} {
  func.func @_encoder_kernel(%arg0: i32, %arg1: memref<16x32xf32, #tpu.memory_space<vmem>>, %arg2: memref<16x16xf32, #tpu.memory_space<vmem>>, %arg3: memref<1x32xf32, #tpu.memory_space<vmem>>, %arg4: memref<1x32xf32, #tpu.memory_space<vmem>>, %arg5: memref<1x32x96xbf16, #tpu.memory_space<vmem>>, %arg6: memref<1x1x96xf32, #tpu.memory_space<vmem>>, %arg7: memref<1x32x32xbf16, #tpu.memory_space<vmem>>, %arg8: memref<1x1x32xf32, #tpu.memory_space<vmem>>, %arg9: memref<1x1x32xf32, #tpu.memory_space<vmem>>, %arg10: memref<1x1x32xf32, #tpu.memory_space<vmem>>, %arg11: memref<1x32x64xbf16, #tpu.memory_space<vmem>>, %arg12: memref<1x1x64xf32, #tpu.memory_space<vmem>>, %arg13: memref<1x64x32xbf16, #tpu.memory_space<vmem>>, %arg14: memref<1x1x32xf32, #tpu.memory_space<vmem>>, %arg15: memref<1x1x32xf32, #tpu.memory_space<vmem>>, %arg16: memref<1x1x32xf32, #tpu.memory_space<vmem>>, %arg17: memref<16x32xf32, #tpu.memory_space<vmem>>, %arg18: memref<16x32xf32, #tpu.memory_space<vmem>>) attributes {dimension_semantics = [#tpu.dimension_semantics<arbitrary>], iteration_bounds = array<i64: 2>, scalar_prefetch = 0 : i64, scratch_operands = 1 : i64, tpu.core_type = #tpu.core_type<tc>, window_params = [{pipeline_mode = #tpu.pipeline_mode<synchronous>, transform_indices = @transform_0, window_bounds = array<i64: 16, 32>}, {pipeline_mode = #tpu.pipeline_mode<synchronous>, transform_indices = @transform_1, window_bounds = array<i64: 16, 16>}, {pipeline_mode = #tpu.pipeline_mode<synchronous>, transform_indices = @transform_2, window_bounds = array<i64: 1, 32>}, {pipeline_mode = #tpu.pipeline_mode<synchronous>, transform_indices = @transform_3, window_bounds = array<i64: 1, 32>}, {transform_indices = @transform_4, window_bounds = array<i64: 1, 32, 96>}, {transform_indices = @transform_5, window_bounds = array<i64: 1, 1, 96>}, {transform_indices = @transform_6, window_bounds = array<i64: 1, 32, 32>}, {transform_indices = @transform_7, window_bounds = array<i64: 1, 1, 32>}, {transform_indices = @transform_8, window_bounds = array<i64: 1, 1, 32>}, {transform_indices = @transform_9, window_bounds = array<i64: 1, 1, 32>}, {transform_indices = @transform_10, window_bounds = array<i64: 1, 32, 64>}, {transform_indices = @transform_11, window_bounds = array<i64: 1, 1, 64>}, {transform_indices = @transform_12, window_bounds = array<i64: 1, 64, 32>}, {transform_indices = @transform_13, window_bounds = array<i64: 1, 1, 32>}, {transform_indices = @transform_14, window_bounds = array<i64: 1, 1, 32>}, {transform_indices = @transform_15, window_bounds = array<i64: 1, 1, 32>}, {pipeline_mode = #tpu.pipeline_mode<synchronous>, transform_indices = @transform_16, window_bounds = array<i64: 16, 32>}]} {
    %c0_i32 = arith.constant 0 : i32
    %0 = arith.cmpi eq, %arg0, %c0_i32 : i32
    %1 = arith.extui %0 : i1 to i32
    %c0_i32_0 = arith.constant 0 : i32
    %2 = arith.cmpi ne, %1, %c0_i32_0 : i32
    scf.if %2 {
      %c0_70 = arith.constant 0 : index
      %c0_71 = arith.constant 0 : index
      %153 = vector.load %arg1[%c0_70, %c0_71] : memref<16x32xf32, #tpu.memory_space<vmem>>, vector<16x32xf32>
      %c0_72 = arith.constant 0 : index
      %c0_73 = arith.constant 0 : index
      %154 = vector.load %arg3[%c0_72, %c0_73] : memref<1x32xf32, #tpu.memory_space<vmem>>, vector<1x32xf32>
      %c0_74 = arith.constant 0 : index
      %c0_75 = arith.constant 0 : index
      %155 = vector.load %arg4[%c0_74, %c0_75] : memref<1x32xf32, #tpu.memory_space<vmem>>, vector<1x32xf32>
      %cst_76 = arith.constant dense<0.000000e+00> : vector<16xf32>
      %156 = vector.multi_reduction <add>, %153, %cst_76 [1] : vector<16x32xf32> to vector<16xf32>
      %157 = vector.shape_cast %156 : vector<16xf32> to vector<16x1xf32>
      %cst_77 = arith.constant 3.200000e+01 : f32
      %158 = vector.broadcast %cst_77 : f32 to vector<16x1xf32>
      %159 = arith.divf %157, %158 : vector<16x1xf32>
      %160 = vector.broadcast %159 : vector<16x1xf32> to vector<16x32xf32>
      %161 = arith.subf %153, %160 : vector<16x32xf32>
      %162 = arith.mulf %161, %161 : vector<16x32xf32>
      %cst_78 = arith.constant dense<0.000000e+00> : vector<16xf32>
      %163 = vector.multi_reduction <add>, %162, %cst_78 [1] : vector<16x32xf32> to vector<16xf32>
      %164 = vector.shape_cast %163 : vector<16xf32> to vector<16x1xf32>
      %cst_79 = arith.constant 3.200000e+01 : f32
      %165 = vector.broadcast %cst_79 : f32 to vector<16x1xf32>
      %166 = arith.divf %164, %165 : vector<16x1xf32>
      %167 = vector.broadcast %159 : vector<16x1xf32> to vector<16x32xf32>
      %168 = arith.subf %153, %167 : vector<16x32xf32>
      %cst_80 = arith.constant 9.99999996E-13 : f32
      %169 = vector.broadcast %cst_80 : f32 to vector<16x1xf32>
      %170 = arith.addf %166, %169 : vector<16x1xf32>
      %171 = math.rsqrt %170 : vector<16x1xf32>
      %172 = vector.broadcast %171 : vector<16x1xf32> to vector<16x32xf32>
      %173 = arith.mulf %168, %172 : vector<16x32xf32>
      %174 = vector.broadcast %154 : vector<1x32xf32> to vector<16x32xf32>
      %175 = arith.mulf %173, %174 : vector<16x32xf32>
      %176 = vector.broadcast %155 : vector<1x32xf32> to vector<16x32xf32>
      %177 = arith.addf %175, %176 : vector<16x32xf32>
      %c0_81 = arith.constant 0 : index
      %c0_82 = arith.constant 0 : index
      %178 = vector.load %arg18[%c0_81, %c0_82] : memref<16x32xf32, #tpu.memory_space<vmem>>, vector<16x32xf32>
      tpu.vector_store %arg18[%c0_81, %c0_82], %177 {strides = array<i32>} : memref<16x32xf32, #tpu.memory_space<vmem>>, vector<16x32xf32>,
    } else {
    }
    %c0 = arith.constant 0 : index
    %c0_1 = arith.constant 0 : index
    %3 = vector.load %arg18[%c0, %c0_1] : memref<16x32xf32, #tpu.memory_space<vmem>>, vector<16x32xf32>
    %c0_2 = arith.constant 0 : index
    %c0_3 = arith.constant 0 : index
    %c0_4 = arith.constant 0 : index
    %4 = vector.load %arg5[%c0_2, %c0_3, %c0_4] : memref<1x32x96xbf16, #tpu.memory_space<vmem>>, vector<1x32x96xbf16>
    %5 = vector.shape_cast %4 : vector<1x32x96xbf16> to vector<32x96xbf16>
    %6 = arith.truncf %3 : vector<16x32xf32> to vector<16x32xbf16>
    %cst = arith.constant dense<0.000000e+00> : vector<16x96xf32>
    %7 = tpu.matmul %6, %5, %cst {dimension_numbers = #tpu.dot_dimension_numbers<[1], [0], [0], [1], [0, 0, 1, 1], [], []>} : vector<16x32xbf16>, vector<32x96xbf16>, vector<16x96xf32> -> vector<16x96xf32>
    %c0_5 = arith.constant 0 : index
    %c0_6 = arith.constant 0 : index
    %c0_7 = arith.constant 0 : index
    %8 = vector.load %arg6[%c0_5, %c0_6, %c0_7] : memref<1x1x96xf32, #tpu.memory_space<vmem>>, vector<1x1x96xf32>
    %9 = vector.shape_cast %8 : vector<1x1x96xf32> to vector<1x96xf32>
    %10 = vector.broadcast %9 : vector<1x96xf32> to vector<16x96xf32>
    %11 = arith.addf %7, %10 : vector<16x96xf32>
    %c0_8 = arith.constant 0 : index
    %c0_9 = arith.constant 0 : index
    %12 = vector.load %arg2[%c0_8, %c0_9] : memref<16x16xf32, #tpu.memory_space<vmem>>, vector<16x16xf32>
    %13 = vector.extract_strided_slice %11 {offsets = [0, 0], sizes = [16, 16], strides = [1, 1]} : vector<16x96xf32> to vector<16x16xf32>
    %14 = arith.truncf %13 : vector<16x16xf32> to vector<16x16xbf16>
    %15 = vector.extract_strided_slice %11 {offsets = [0, 32], sizes = [16, 16], strides = [1, 1]} : vector<16x96xf32> to vector<16x16xf32>
    %16 = arith.truncf %15 : vector<16x16xf32> to vector<16x16xbf16>
    %17 = vector.extract_strided_slice %11 {offsets = [0, 64], sizes = [16, 16], strides = [1, 1]} : vector<16x96xf32> to vector<16x16xf32>
    %18 = arith.truncf %17 : vector<16x16xf32> to vector<16x16xbf16>
    %cst_10 = arith.constant dense<0.000000e+00> : vector<16x16xf32>
    %19 = tpu.matmul %14, %16, %cst_10 {dimension_numbers = #tpu.dot_dimension_numbers<[1], [1], [0], [0], [0, 0, 1, 0], [], []>} : vector<16x16xbf16>, vector<16x16xbf16>, vector<16x16xf32> -> vector<16x16xf32>
    %cst_11 = arith.constant 2.500000e-01 : f32
    %20 = vector.broadcast %cst_11 : f32 to vector<16x16xf32>
    %21 = arith.mulf %19, %20 : vector<16x16xf32>
    %22 = arith.addf %21, %12 : vector<16x16xf32>
    %cst_12 = arith.constant dense<0xFF800000> : vector<16xf32>
    %23 = vector.multi_reduction <maximumf>, %22, %cst_12 [1] : vector<16x16xf32> to vector<16xf32>
    %24 = vector.shape_cast %23 : vector<16xf32> to vector<16x1xf32>
    %25 = vector.broadcast %24 : vector<16x1xf32> to vector<16x16xf32>
    %26 = arith.subf %22, %25 : vector<16x16xf32>
    %27 = math.exp %26 : vector<16x16xf32>
    %cst_13 = arith.constant dense<0.000000e+00> : vector<16xf32>
    %28 = vector.multi_reduction <add>, %27, %cst_13 [1] : vector<16x16xf32> to vector<16xf32>
    %29 = vector.shape_cast %28 : vector<16xf32> to vector<16x1xf32>
    %30 = tpu.reciprocal %29 {approx = true} : vector<16x1xf32> -> vector<16x1xf32>
    %31 = vector.broadcast %30 : vector<16x1xf32> to vector<16x16xf32>
    %32 = arith.mulf %27, %31 : vector<16x16xf32>
    %33 = arith.truncf %32 : vector<16x16xf32> to vector<16x16xbf16>
    %cst_14 = arith.constant dense<0.000000e+00> : vector<16x16xf32>
    %34 = tpu.matmul %33, %18, %cst_14 {dimension_numbers = #tpu.dot_dimension_numbers<[1], [0], [0], [1], [0, 0, 1, 1], [], []>} : vector<16x16xbf16>, vector<16x16xbf16>, vector<16x16xf32> -> vector<16x16xf32>
    %35 = vector.extract_strided_slice %11 {offsets = [0, 16], sizes = [16, 16], strides = [1, 1]} : vector<16x96xf32> to vector<16x16xf32>
    %36 = arith.truncf %35 : vector<16x16xf32> to vector<16x16xbf16>
    %37 = vector.extract_strided_slice %11 {offsets = [0, 48], sizes = [16, 16], strides = [1, 1]} : vector<16x96xf32> to vector<16x16xf32>
    %38 = arith.truncf %37 : vector<16x16xf32> to vector<16x16xbf16>
    %39 = vector.extract_strided_slice %11 {offsets = [0, 80], sizes = [16, 16], strides = [1, 1]} : vector<16x96xf32> to vector<16x16xf32>
    %40 = arith.truncf %39 : vector<16x16xf32> to vector<16x16xbf16>
    %cst_15 = arith.constant dense<0.000000e+00> : vector<16x16xf32>
    %41 = tpu.matmul %36, %38, %cst_15 {dimension_numbers = #tpu.dot_dimension_numbers<[1], [1], [0], [0], [0, 0, 1, 0], [], []>} : vector<16x16xbf16>, vector<16x16xbf16>, vector<16x16xf32> -> vector<16x16xf32>
    %cst_16 = arith.constant 2.500000e-01 : f32
    %42 = vector.broadcast %cst_16 : f32 to vector<16x16xf32>
    %43 = arith.mulf %41, %42 : vector<16x16xf32>
    %44 = arith.addf %43, %12 : vector<16x16xf32>
    %cst_17 = arith.constant dense<0xFF800000> : vector<16xf32>
    %45 = vector.multi_reduction <maximumf>, %44, %cst_17 [1] : vector<16x16xf32> to vector<16xf32>
    %46 = vector.shape_cast %45 : vector<16xf32> to vector<16x1xf32>
    %47 = vector.broadcast %46 : vector<16x1xf32> to vector<16x16xf32>
    %48 = arith.subf %44, %47 : vector<16x16xf32>
    %49 = math.exp %48 : vector<16x16xf32>
    %cst_18 = arith.constant dense<0.000000e+00> : vector<16xf32>
    %50 = vector.multi_reduction <add>, %49, %cst_18 [1] : vector<16x16xf32> to vector<16xf32>
    %51 = vector.shape_cast %50 : vector<16xf32> to vector<16x1xf32>
    %52 = tpu.reciprocal %51 {approx = true} : vector<16x1xf32> -> vector<16x1xf32>
    %53 = vector.broadcast %52 : vector<16x1xf32> to vector<16x16xf32>
    %54 = arith.mulf %49, %53 : vector<16x16xf32>
    %55 = arith.truncf %54 : vector<16x16xf32> to vector<16x16xbf16>
    %cst_19 = arith.constant dense<0.000000e+00> : vector<16x16xf32>
    %56 = tpu.matmul %55, %40, %cst_19 {dimension_numbers = #tpu.dot_dimension_numbers<[1], [0], [0], [1], [0, 0, 1, 1], [], []>} : vector<16x16xbf16>, vector<16x16xbf16>, vector<16x16xf32> -> vector<16x16xf32>
    %57 = tpu.concatenate %34, %56 in 1 : vector<16x16xf32>, vector<16x16xf32> -> vector<16x32xf32>
    %c0_20 = arith.constant 0 : index
    %c0_21 = arith.constant 0 : index
    %c0_22 = arith.constant 0 : index
    %58 = vector.load %arg7[%c0_20, %c0_21, %c0_22] : memref<1x32x32xbf16, #tpu.memory_space<vmem>>, vector<1x32x32xbf16>
    %59 = vector.shape_cast %58 : vector<1x32x32xbf16> to vector<32x32xbf16>
    %60 = arith.truncf %57 : vector<16x32xf32> to vector<16x32xbf16>
    %cst_23 = arith.constant dense<0.000000e+00> : vector<16x32xf32>
    %61 = tpu.matmul %60, %59, %cst_23 {dimension_numbers = #tpu.dot_dimension_numbers<[1], [0], [0], [1], [0, 0, 1, 1], [], []>} : vector<16x32xbf16>, vector<32x32xbf16>, vector<16x32xf32> -> vector<16x32xf32>
    %c0_24 = arith.constant 0 : index
    %c0_25 = arith.constant 0 : index
    %c0_26 = arith.constant 0 : index
    %62 = vector.load %arg8[%c0_24, %c0_25, %c0_26] : memref<1x1x32xf32, #tpu.memory_space<vmem>>, vector<1x1x32xf32>
    %63 = vector.shape_cast %62 : vector<1x1x32xf32> to vector<1x32xf32>
    %64 = vector.broadcast %63 : vector<1x32xf32> to vector<16x32xf32>
    %65 = arith.addf %61, %64 : vector<16x32xf32>
    %66 = arith.addf %65, %3 : vector<16x32xf32>
    %c0_27 = arith.constant 0 : index
    %c0_28 = arith.constant 0 : index
    %c0_29 = arith.constant 0 : index
    %67 = vector.load %arg9[%c0_27, %c0_28, %c0_29] : memref<1x1x32xf32, #tpu.memory_space<vmem>>, vector<1x1x32xf32>
    %68 = vector.shape_cast %67 : vector<1x1x32xf32> to vector<1x32xf32>
    %c0_30 = arith.constant 0 : index
    %c0_31 = arith.constant 0 : index
    %c0_32 = arith.constant 0 : index
    %69 = vector.load %arg10[%c0_30, %c0_31, %c0_32] : memref<1x1x32xf32, #tpu.memory_space<vmem>>, vector<1x1x32xf32>
    %70 = vector.shape_cast %69 : vector<1x1x32xf32> to vector<1x32xf32>
    %cst_33 = arith.constant dense<0.000000e+00> : vector<16xf32>
    %71 = vector.multi_reduction <add>, %66, %cst_33 [1] : vector<16x32xf32> to vector<16xf32>
    %72 = vector.shape_cast %71 : vector<16xf32> to vector<16x1xf32>
    %cst_34 = arith.constant 3.200000e+01 : f32
    %73 = vector.broadcast %cst_34 : f32 to vector<16x1xf32>
    %74 = arith.divf %72, %73 : vector<16x1xf32>
    %75 = vector.broadcast %74 : vector<16x1xf32> to vector<16x32xf32>
    %76 = arith.subf %66, %75 : vector<16x32xf32>
    %77 = arith.mulf %76, %76 : vector<16x32xf32>
    %cst_35 = arith.constant dense<0.000000e+00> : vector<16xf32>
    %78 = vector.multi_reduction <add>, %77, %cst_35 [1] : vector<16x32xf32> to vector<16xf32>
    %79 = vector.shape_cast %78 : vector<16xf32> to vector<16x1xf32>
    %cst_36 = arith.constant 3.200000e+01 : f32
    %80 = vector.broadcast %cst_36 : f32 to vector<16x1xf32>
    %81 = arith.divf %79, %80 : vector<16x1xf32>
    %82 = vector.broadcast %74 : vector<16x1xf32> to vector<16x32xf32>
    %83 = arith.subf %66, %82 : vector<16x32xf32>
    %cst_37 = arith.constant 9.99999996E-13 : f32
    %84 = vector.broadcast %cst_37 : f32 to vector<16x1xf32>
    %85 = arith.addf %81, %84 : vector<16x1xf32>
    %86 = math.rsqrt %85 : vector<16x1xf32>
    %87 = vector.broadcast %86 : vector<16x1xf32> to vector<16x32xf32>
    %88 = arith.mulf %83, %87 : vector<16x32xf32>
    %89 = vector.broadcast %68 : vector<1x32xf32> to vector<16x32xf32>
    %90 = arith.mulf %88, %89 : vector<16x32xf32>
    %91 = vector.broadcast %70 : vector<1x32xf32> to vector<16x32xf32>
    %92 = arith.addf %90, %91 : vector<16x32xf32>
    %c0_38 = arith.constant 0 : index
    %c0_39 = arith.constant 0 : index
    %c0_40 = arith.constant 0 : index
    %93 = vector.load %arg11[%c0_38, %c0_39, %c0_40] : memref<1x32x64xbf16, #tpu.memory_space<vmem>>, vector<1x32x64xbf16>
    %94 = vector.shape_cast %93 : vector<1x32x64xbf16> to vector<32x64xbf16>
    %95 = arith.truncf %92 : vector<16x32xf32> to vector<16x32xbf16>
    %cst_41 = arith.constant dense<0.000000e+00> : vector<16x64xf32>
    %96 = tpu.matmul %95, %94, %cst_41 {dimension_numbers = #tpu.dot_dimension_numbers<[1], [0], [0], [1], [0, 0, 1, 1], [], []>} : vector<16x32xbf16>, vector<32x64xbf16>, vector<16x64xf32> -> vector<16x64xf32>
    %c0_42 = arith.constant 0 : index
    %c0_43 = arith.constant 0 : index
    %c0_44 = arith.constant 0 : index
    %97 = vector.load %arg12[%c0_42, %c0_43, %c0_44] : memref<1x1x64xf32, #tpu.memory_space<vmem>>, vector<1x1x64xf32>
    %98 = vector.shape_cast %97 : vector<1x1x64xf32> to vector<1x64xf32>
    %99 = vector.broadcast %98 : vector<1x64xf32> to vector<16x64xf32>
    %100 = arith.addf %96, %99 : vector<16x64xf32>
    %cst_45 = arith.constant 5.000000e-01 : f32
    %101 = vector.broadcast %cst_45 : f32 to vector<16x64xf32>
    %102 = arith.mulf %101, %100 : vector<16x64xf32>
    %cst_46 = arith.constant 4.471500e-02 : f32
    %103 = vector.broadcast %cst_46 : f32 to vector<16x64xf32>
    %104 = arith.mulf %103, %100 : vector<16x64xf32>
    %105 = arith.mulf %104, %100 : vector<16x64xf32>
    %106 = arith.mulf %105, %100 : vector<16x64xf32>
    %107 = arith.addf %100, %106 : vector<16x64xf32>
    %cst_47 = arith.constant 0.797884583 : f32
    %108 = vector.broadcast %cst_47 : f32 to vector<16x64xf32>
    %109 = arith.mulf %108, %107 : vector<16x64xf32>
    %110 = math.tanh %109 : vector<16x64xf32>
    %cst_48 = arith.constant 1.000000e+00 : f32
    %111 = vector.broadcast %cst_48 : f32 to vector<16x64xf32>
    %112 = arith.addf %111, %110 : vector<16x64xf32>
    %113 = arith.mulf %102, %112 : vector<16x64xf32>
    %c0_49 = arith.constant 0 : index
    %c0_50 = arith.constant 0 : index
    %c0_51 = arith.constant 0 : index
    %114 = vector.load %arg13[%c0_49, %c0_50, %c0_51] : memref<1x64x32xbf16, #tpu.memory_space<vmem>>, vector<1x64x32xbf16>
    %115 = vector.shape_cast %114 : vector<1x64x32xbf16> to vector<64x32xbf16>
    %116 = arith.truncf %113 : vector<16x64xf32> to vector<16x64xbf16>
    %cst_52 = arith.constant dense<0.000000e+00> : vector<16x32xf32>
    %117 = tpu.matmul %116, %115, %cst_52 {dimension_numbers = #tpu.dot_dimension_numbers<[1], [0], [0], [1], [0, 0, 1, 1], [], []>} : vector<16x64xbf16>, vector<64x32xbf16>, vector<16x32xf32> -> vector<16x32xf32>
    %c0_53 = arith.constant 0 : index
    %c0_54 = arith.constant 0 : index
    %c0_55 = arith.constant 0 : index
    %118 = vector.load %arg14[%c0_53, %c0_54, %c0_55] : memref<1x1x32xf32, #tpu.memory_space<vmem>>, vector<1x1x32xf32>
    %119 = vector.shape_cast %118 : vector<1x1x32xf32> to vector<1x32xf32>
    %120 = vector.broadcast %119 : vector<1x32xf32> to vector<16x32xf32>
    %121 = arith.addf %117, %120 : vector<16x32xf32>
    %122 = arith.addf %121, %92 : vector<16x32xf32>
    %c0_56 = arith.constant 0 : index
    %c0_57 = arith.constant 0 : index
    %c0_58 = arith.constant 0 : index
    %123 = vector.load %arg15[%c0_56, %c0_57, %c0_58] : memref<1x1x32xf32, #tpu.memory_space<vmem>>, vector<1x1x32xf32>
    %124 = vector.shape_cast %123 : vector<1x1x32xf32> to vector<1x32xf32>
    %c0_59 = arith.constant 0 : index
    %c0_60 = arith.constant 0 : index
    %c0_61 = arith.constant 0 : index
    %125 = vector.load %arg16[%c0_59, %c0_60, %c0_61] : memref<1x1x32xf32, #tpu.memory_space<vmem>>, vector<1x1x32xf32>
    %126 = vector.shape_cast %125 : vector<1x1x32xf32> to vector<1x32xf32>
    %cst_62 = arith.constant dense<0.000000e+00> : vector<16xf32>
    %127 = vector.multi_reduction <add>, %122, %cst_62 [1] : vector<16x32xf32> to vector<16xf32>
    %128 = vector.shape_cast %127 : vector<16xf32> to vector<16x1xf32>
    %cst_63 = arith.constant 3.200000e+01 : f32
    %129 = vector.broadcast %cst_63 : f32 to vector<16x1xf32>
    %130 = arith.divf %128, %129 : vector<16x1xf32>
    %131 = vector.broadcast %130 : vector<16x1xf32> to vector<16x32xf32>
    %132 = arith.subf %122, %131 : vector<16x32xf32>
    %133 = arith.mulf %132, %132 : vector<16x32xf32>
    %cst_64 = arith.constant dense<0.000000e+00> : vector<16xf32>
    %134 = vector.multi_reduction <add>, %133, %cst_64 [1] : vector<16x32xf32> to vector<16xf32>
    %135 = vector.shape_cast %134 : vector<16xf32> to vector<16x1xf32>
    %cst_65 = arith.constant 3.200000e+01 : f32
    %136 = vector.broadcast %cst_65 : f32 to vector<16x1xf32>
    %137 = arith.divf %135, %136 : vector<16x1xf32>
    %138 = vector.broadcast %130 : vector<16x1xf32> to vector<16x32xf32>
    %139 = arith.subf %122, %138 : vector<16x32xf32>
    %cst_66 = arith.constant 9.99999996E-13 : f32
    %140 = vector.broadcast %cst_66 : f32 to vector<16x1xf32>
    %141 = arith.addf %137, %140 : vector<16x1xf32>
    %142 = math.rsqrt %141 : vector<16x1xf32>
    %143 = vector.broadcast %142 : vector<16x1xf32> to vector<16x32xf32>
    %144 = arith.mulf %139, %143 : vector<16x32xf32>
    %145 = vector.broadcast %124 : vector<1x32xf32> to vector<16x32xf32>
    %146 = arith.mulf %144, %145 : vector<16x32xf32>
    %147 = vector.broadcast %126 : vector<1x32xf32> to vector<16x32xf32>
    %148 = arith.addf %146, %147 : vector<16x32xf32>
    %c0_67 = arith.constant 0 : index
    %c0_68 = arith.constant 0 : index
    %149 = vector.load %arg18[%c0_67, %c0_68] : memref<16x32xf32, #tpu.memory_space<vmem>>, vector<16x32xf32>
    tpu.vector_store %arg18[%c0_67, %c0_68], %148 {strides = array<i32>} : memref<16x32xf32, #tpu.memory_space<vmem>>, vector<16x32xf32>,
    %c1_i32 = arith.constant 1 : i32
    %150 = arith.cmpi eq, %arg0, %c1_i32 : i32
    %151 = arith.extui %150 : i1 to i32
    %c0_i32_69 = arith.constant 0 : i32
    %152 = arith.cmpi ne, %151, %c0_i32_69 : i32
    scf.if %152 {
      %c0_70 = arith.constant 0 : index
      %c0_71 = arith.constant 0 : index
      %153 = vector.load %arg17[%c0_70, %c0_71] : memref<16x32xf32, #tpu.memory_space<vmem>>, vector<16x32xf32>
      tpu.vector_store %arg17[%c0_70, %c0_71], %148 {strides = array<i32>} : memref<16x32xf32, #tpu.memory_space<vmem>>, vector<16x32xf32>,
    } else {
    }
    return
  }
  func.func @transform_0(%arg0: i32) -> (i32, i32) {
    %c0_i32 = arith.constant 0 : i32
    %c0_i32_0 = arith.constant 0 : i32
    %c0_i32_1 = arith.constant 0 : i32
    return %c0_i32, %c0_i32_0 : i32, i32
  }
  func.func @transform_1(%arg0: i32) -> (i32, i32) {
    %c0_i32 = arith.constant 0 : i32
    %c0_i32_0 = arith.constant 0 : i32
    %c0_i32_1 = arith.constant 0 : i32
    return %c0_i32, %c0_i32_0 : i32, i32
  }
  func.func @transform_2(%arg0: i32) -> (i32, i32) {
    %c0_i32 = arith.constant 0 : i32
    %c0_i32_0 = arith.constant 0 : i32
    %c0_i32_1 = arith.constant 0 : i32
    return %c0_i32, %c0_i32_0 : i32, i32
  }
  func.func @transform_3(%arg0: i32) -> (i32, i32) {
    %c0_i32 = arith.constant 0 : i32
    %c0_i32_0 = arith.constant 0 : i32
    %c0_i32_1 = arith.constant 0 : i32
    return %c0_i32, %c0_i32_0 : i32, i32
  }
  func.func @transform_4(%arg0: i32) -> (i32, i32, i32) {
    %c0_i32 = arith.constant 0 : i32
    %c0_i32_0 = arith.constant 0 : i32
    %c0_i32_1 = arith.constant 0 : i32
    return %arg0, %c0_i32, %c0_i32_0 : i32, i32, i32
  }
  func.func @transform_5(%arg0: i32) -> (i32, i32, i32) {
    %c0_i32 = arith.constant 0 : i32
    %c0_i32_0 = arith.constant 0 : i32
    %c0_i32_1 = arith.constant 0 : i32
    return %arg0, %c0_i32, %c0_i32_0 : i32, i32, i32
  }
  func.func @transform_6(%arg0: i32) -> (i32, i32, i32) {
    %c0_i32 = arith.constant 0 : i32
    %c0_i32_0 = arith.constant 0 : i32
    %c0_i32_1 = arith.constant 0 : i32
    return %arg0, %c0_i32, %c0_i32_0 : i32, i32, i32
  }
  func.func @transform_7(%arg0: i32) -> (i32, i32, i32) {
    %c0_i32 = arith.constant 0 : i32
    %c0_i32_0 = arith.constant 0 : i32
    %c0_i32_1 = arith.constant 0 : i32
    return %arg0, %c0_i32, %c0_i32_0 : i32, i32, i32
  }
  func.func @transform_8(%arg0: i32) -> (i32, i32, i32) {
    %c0_i32 = arith.constant 0 : i32
    %c0_i32_0 = arith.constant 0 : i32
    %c0_i32_1 = arith.constant 0 : i32
    return %arg0, %c0_i32, %c0_i32_0 : i32, i32, i32
  }
  func.func @transform_9(%arg0: i32) -> (i32, i32, i32) {
    %c0_i32 = arith.constant 0 : i32
    %c0_i32_0 = arith.constant 0 : i32
    %c0_i32_1 = arith.constant 0 : i32
    return %arg0, %c0_i32, %c0_i32_0 : i32, i32, i32
  }
  func.func @transform_10(%arg0: i32) -> (i32, i32, i32) {
    %c0_i32 = arith.constant 0 : i32
    %c0_i32_0 = arith.constant 0 : i32
    %c0_i32_1 = arith.constant 0 : i32
    return %arg0, %c0_i32, %c0_i32_0 : i32, i32, i32
  }
  func.func @transform_11(%arg0: i32) -> (i32, i32, i32) {
    %c0_i32 = arith.constant 0 : i32
    %c0_i32_0 = arith.constant 0 : i32
    %c0_i32_1 = arith.constant 0 : i32
    return %arg0, %c0_i32, %c0_i32_0 : i32, i32, i32
  }
  func.func @transform_12(%arg0: i32) -> (i32, i32, i32) {
    %c0_i32 = arith.constant 0 : i32
    %c0_i32_0 = arith.constant 0 : i32
    %c0_i32_1 = arith.constant 0 : i32
    return %arg0, %c0_i32, %c0_i32_0 : i32, i32, i32
  }
  func.func @transform_13(%arg0: i32) -> (i32, i32, i32) {
    %c0_i32 = arith.constant 0 : i32
    %c0_i32_0 = arith.constant 0 : i32
    %c0_i32_1 = arith.constant 0 : i32
    return %arg0, %c0_i32, %c0_i32_0 : i32, i32, i32
  }
  func.func @transform_14(%arg0: i32) -> (i32, i32, i32) {
    %c0_i32 = arith.constant 0 : i32
    %c0_i32_0 = arith.constant 0 : i32
    %c0_i32_1 = arith.constant 0 : i32
    return %arg0, %c0_i32, %c0_i32_0 : i32, i32, i32
  }
  func.func @transform_15(%arg0: i32) -> (i32, i32, i32) {
    %c0_i32 = arith.constant 0 : i32
    %c0_i32_0 = arith.constant 0 : i32
    %c0_i32_1 = arith.constant 0 : i32
    return %arg0, %c0_i32, %c0_i32_0 : i32, i32, i32
  }
  func.func @transform_16(%arg0: i32) -> (i32, i32) {
    %c0_i32 = arith.constant 0 : i32
    %c0_i32_0 = arith.constant 0 : i32
    %c0_i32_1 = arith.constant 0 : i32
    return %c0_i32, %c0_i32_0 : i32, i32
  }
}

</mosaic_0001>

<bundles_post_ra>
// kernel: bert_classifier_forward.1
= control target key start
LH: loop header
LB: loop body
LE: loop exit
PB: predicated region body
PF: predicated region fallthrough
CT: control target
= control target key end

     0   :  { %s1838_s21 = smov 0   ;;  %s2068_s0 = inlined_call_operand.vmem [shape: f32[16,32], index: 0, kind: input, shape index: {}]   ;;  %s2069_s1 = inlined_call_operand.vmem [shape: f32[16,16], index: 1, kind: input, shape index: {}]   ;;  %s2070_s2 = inlined_call_operand.vmem [shape: f32[1,32], index: 2, kind: input, shape index: {}]   ;;  %s2071_s3 = inlined_call_operand.vmem [shape: f32[1,32], index: 3, kind: input, shape index: {}]   ;;  %s2072_s4 = inlined_call_operand.vmem [shape: bf16[2,32,96], index: 4, kind: input, shape index: {}]   ;;  %s2073_s5 = inlined_call_operand.vmem [shape: f32[2,1,96], index: 5, kind: input, shape index: {}]   ;;  %s2074_s6 = inlined_call_operand.vmem [shape: bf16[2,32,32], index: 6, kind: input, shape index: {}]   ;;  %s2075_s7 = inlined_call_operand.vmem [shape: f32[2,1,32], index: 7, kind: input, shape index: {}]   ;;  %s2076_s8 = inlined_call_operand.vmem [shape: f32[2,1,32], index: 8, kind: input, shape index: {}]   ;;  %s2077_s9 = inlined_call_operand.vmem [shape: f32[2,1,32], index: 9, kind: input, shape index: {}]   ;;  %s2078_s10 = inlined_call_operand.vmem [shape: bf16[2,32,64], index: 10, kind: input, shape index: {}]   ;;  %s2079_s11 = inlined_call_operand.vmem [shape: f32[2,1,64], index: 11, kind: input, shape index: {}]   ;;  %s2080_s12 = inlined_call_operand.vmem [shape: bf16[2,64,32], index: 12, kind: input, shape index: {}]   ;;  %s2081_s13 = inlined_call_operand.vmem [shape: f32[2,1,32], index: 13, kind: input, shape index: {}]   ;;  %s2082_s14 = inlined_call_operand.vmem [shape: f32[2,1,32], index: 14, kind: input, shape index: {}]   ;;  %s2083_s15 = inlined_call_operand.vmem [shape: f32[2,1,32], index: 15, kind: input, shape index: {}]   ;;  %s2084_s16 = inlined_call_operand.vmem [shape: f32[16,32], index: 16, kind: output, shape index: {}]  }
   0x1   :  { %2090 = sst [smem:[#allocation5_spill]] %s2068_s0 }
   0x2   :  { %2091 = sst [smem:[#allocation6_spill]] %s2069_s1 }
   0x3   :  { %2092 = sst [smem:[#allocation7_spill]] %s2071_s3 }
   0x4   :  { %2093 = sst [smem:[#allocation8_spill]] %s2072_s4 }
   0x5   :  { %2094 = sst [smem:[#allocation9_spill]] %s2074_s6 }
   0x6   :  { %2095 = sst [smem:[#allocation10_spill]] %s2084_s16 }
   0x7 LB: > { %2096 = sst [smem:[#allocation3_spill]] %s1743_s21  ;;  %s1844_s22 = sadd.s32 4294967295, %s1743_s21   ;;  %s1743_s21 = sphi %s1838_s21, %s26_s21  }
   0x8   : > { %p1547_p0 = scmp.ge.s32.totalorder %s1743_s21, 1  ;;  %p551_p1 = scmp.lt.s32.totalorder %s1743_s21, 3 }
   0xa   : > { %p552_p2 = pnand %p1547_p0, %p551_p1 }
   0xc   : > { %555 = sbr.rel (%p552_p2) target bundleno = 2885 (0xb45), region = 84 }
  0x13   : > { %p635_p3 = scmp.lt.s32.totalorder %s1844_s22, 1  ;;  %s2097_s4 = sld [smem:[#allocation8_spill]] }
  0x14   : > { %s2098_s6 = sld [smem:[#allocation9_spill]]  ;;  %p1556_p4 = scmp.ne.s32.totalorder %s1844_s22, 0 }
  0x15   : > { %s1850_s23 = scalar_select %p635_p3, %s1844_s22, 1 }
  0x16   : > { %683 = sbr.rel (%p1556_p4) target bundleno = 347 (0x15b), region = 88  ;;  %s2100_s19 = sld [smem:[#allocation5_spill]] (!%p1556_p4)  ;;  %vm688_vm0 = vcmask (!%p1556_p4), 261120   ;;  %v1557_v21 = vld [vmem:[%s2070_s2] ss:$0 sm:$0xff] (!%p1556_p4) }
  0x17   : > { %s1588_s24 = sshll.u32 %s1850_s23, 4  ;;  %s672_s25 = scalar_lea.vmem %s2081_s13, %s1850_s23 }
  0x18   : > { %s675_s28 = scalar_lea.vmem %s2082_s14, %s1850_s23  ;;  %s678_s3 = scalar_lea.vmem %s2083_s15, %s1850_s23 }
  0x19   : > { %s1860_s30 = scalar_lea.vmem %s2097_s4, %s1588_s24  ;;  %s1882_s4 = scalar_lea.vmem %s2078_s10, %s1588_s24 }
  0x1a   : > { %s1865_s18 = scalar_lea.vmem %s2098_s6, %s1588_s24  ;;  %s664_s6 = scalar_lea.vmem %s2079_s11, %s1850_s23 }
  0x1b   : > { %2099 = sst [smem:[#allocation4_spill]] %s1865_s18  ;;  %s1591_s18 = sshll.u32 %s1850_s23, 5 }
  0x1c   : > { %s1892_s21 = scalar_lea.vmem %s2080_s12, %s1591_s18  ;;  %v684_v0 = vld [vmem:[%s2100_s19] sm:$0xff] (!%p1556_p4)  ;;  %v685_v1 = vld [vmem:[%s2100_s19 + $0x8] sm:$0xff] (!%p1556_p4)  ;;  %s2101_s24 = sld [smem:[#allocation7_spill]] (!%p1556_p4) }
  0x1d   : > { %v689_v2 = vsel %vm688_vm0, %v684_v0, 0.0  ;;  %v692_v3 = vsel %vm688_vm0, %v685_v1, 0.0 }
  0x1e   : > { %690 = vadd.xlane.f32.xlu0 %v689_v2 }
  0x22   : > { %693 = vadd.xlane.f32.xlu0 %v692_v3  ;;  %v1558_v23 = vld [vmem:[%s2101_s24] ss:$0 sm:$0xff] }
  0xab   : > { %v691_v4 = vpop.xlane.xlu0 %690 }
  0xac   : > { %v696_v5 = vmul.f32 0.03125, %v691_v4 }
  0xae   : > { %v698_v6 = vsub.f32 %v684_v0, %v696_v5 }
  0xaf   : > { %v694_v7 = vpop.xlane.xlu0 %693 }
  0xb0   : > { %v697_v8 = vmul.f32 0.03125, %v694_v7  ;;  %v700_v9 = vmul.f32 %v698_v6, %v698_v6 }
  0xb2   : > { %v699_v10 = vsub.f32 %v685_v1, %v697_v8  ;;  %v702_v11 = vsel %vm688_vm0, %v700_v9, 0.0 }
  0xb3   : > { %703 = vadd.xlane.f32.xlu1 %v702_v11 }
  0xb4   : > { %v701_v12 = vmul.f32 %v699_v10, %v699_v10 }
  0xb6   : > { %v705_v13 = vsel %vm688_vm0, %v701_v12, 0.0 }
  0xb7   : > { %706 = vadd.xlane.f32.xlu1 %v705_v13 }
 0x140   : > { %v704_v14 = vpop.xlane.xlu1 %703 }
 0x141   : > { %v708_v15 = vmul.f32 0.03125, %v704_v14 }
 0x143   : > { %v710_v16 = vadd.f32 1e-12, %v708_v15 }
 0x144   : > { %v707_v17 = vpop.xlane.xlu1 %706 }
 0x145   : > { %1690 = vrsqrt.f32 %v710_v16  ;;  %v709_v18 = vmul.f32 0.03125, %v707_v17 }
 0x147   : > { %v711_v19 = vadd.f32 1e-12, %v709_v18 }
 0x149   : > { %1692 = vrsqrt.f32 %v711_v19 }
 0x14f   : > { %v1691_v20 = vpop.eup %1690 }
 0x150   : > { %v714_v22 = vmul.f32 %v1691_v20, %v698_v6 }
 0x152   : > { %v722_v24 = vmul.f32 %v1557_v21, %v714_v22 }
 0x153   : > { %v1693_v25 = vpop.eup %1692 }
 0x154   : > { %v730_v26 = vadd.f32 %v1558_v23, %v722_v24  ;;  %v715_v27 = vmul.f32 %v1693_v25, %v699_v10 }
 0x156   : > { %732 = vst.msk [vmem:[#allocation2] sm:$0xff] %vm688_vm0, %v730_v26  ;;  %v723_v28 = vmul.f32 %v1557_v21, %v715_v27 }
 0x158   : > { %v731_v29 = vadd.f32 %v1558_v23, %v723_v28 }
 0x15a   : > { %733 = vst.msk [vmem:[#allocation2 + $0x8] sm:$0xff] %vm688_vm0, %v731_v29 }
 0x15b PF: > { %v1699_v30 = vld [vmem:[%s1860_s30] sm:$0xff]   ;;  %v1745_v31 = vmov 0.0   ;;  %v1700_v32 = vld [vmem:[%s1860_s30 + $0x8] sm:$0xff]   ;;  %vm1746_vm1 = vmmov 0   ;;  %vm760_vm2 = vcmask 261120   ;;  %s2102_s0 = scalar_lea.vmem %s2073_s5, %s1850_s23  ;;  %s1747_s17 = smov 112  }
 0x15c   : > { %1614 = vmatprep.subr.bf16.mxu0 %v1745_v31  ;;  %1622 = vmatprep.subr.bf16.mxu1 %v1745_v31  ;;  %v1559_v36 = vld [vmem:[%s2102_s0] ss:$0 sm:$0xff]  ;;  %s1748_s18 = smov 96   ;;  %s1749_s20 = smov 80   ;;  %vm811_vm3 = vcmask 130048   ;;  %vm1309_vm4 = vcmask 523264  }
 0x15d   : > { %1615 = vmatpush3.bf16.msra.mxu0 %v1699_v30  ;;  %1618 = vmatprep.mubr.msk.bf16.mxu0 %vm1746_vm1, %v1745_v31  ;;  %v1931_v33 = vld [vmem:[#allocation2] sm:$0xff]  ;;  %s2103_s16 = sld [smem:[#allocation6_spill]]  ;;  %s1750_s30 = smov 48  }
 0x15e   : > { %1616 = vmatprep.subr.bf16.mxu0 %v1745_v31  ;;  %1624 = vmatprep.mubr.msk.bf16.mxu1 %vm1746_vm1, %v1745_v31  ;;  %s1751_s29 = smov 64   ;;  %s2104_s0 = sld [smem:[#allocation4_spill]] }
 0x15f   : > { %s2105_s27 = scalar_lea.vmem %s2075_s7, %s1850_s23  ;;  %p1585_p5 = scmp.ne.s32.totalorder %s1844_s22, 1 }
 0x160   : > { %s2108_s26 = sld [smem:[#allocation10_spill]] (!%p1585_p5) }
 0x161   : > { %v1933_v34 = vld [vmem:[#allocation2 + $0x8] sm:$0xff]  ;;  %1617 = vmatpush3.bf16.msra.mxu0 %v1700_v32 }
 0x162   : > { %v740_v35 = vpack.c.bf16 %v1933_v34, %v1931_v33  ;;  %1628 = vmatprep.subr.bf16.mxu0 %v1745_v31 }
 0x163   : > { %v805_v50 = vld [vmem:[%s2103_s16] sm:$0xff]  ;;  %v806_v54 = vld [vmem:[%s2103_s16 + $0x8] sm:$0xff] }
 0x164   : > { %1619 = vmatmul.mubr.msk.bf16.vlgmr.msra.gmra.mrb[0].mxu0 %vm760_vm2, %v740_v35 }
 0x165   : > { %1630 = vmatprep.mubr.msk.bf16.mxu0 %vm1746_vm1, %v1745_v31 }
 0x237   : > { %v798_v37 = vpop.f32.mrb[0].mxu0 }
 0x238   : > { %v1620_v38 = vpop.f32.mrb[1].mxu0  ;;  %v799_v40 = vadd.f32 %v1559_v36, %v798_v37 }
 0x239   : > { %v801_v39 = vpop.f32.mrb[2].mxu0 }
 0x23a   : > { %v802_v41 = vadd.f32 %v1559_v36, %v801_v39  ;;  %v1621_v42 = vpop.f32.mrb[3].mxu0 }
 0x23c   : > { %v1949_v43 = vpack.c.bf16 %v802_v41, %v799_v40 }
 0x23e   : > { %933 = vrot.lane.b32.xlu1 %v1949_v43, %s1747_s17  ;;  %809 = vrot.lane.b32.xlu0 %v1949_v43, %s1748_s18  ;;  %s1752_s17 = smov 16  }
 0x242   : > { %935 = vrot.lane.b32.xlu0 %v1949_v43, %s1749_s20 }
 0x2b0   : > { %v810_v44 = vpop.permute.xlu0 %809  ;;  %v934_v48 = vpop.permute.xlu1 %933 }
 0x2b1   : > { %v816_v45 = vsel %vm811_vm3, %v810_v44, 0 }
 0x2b2   : > { %1623 = vmatpush3.bf16.xpose.msra.mxu1 %v816_v45 }
 0x2b3   : > { %1634 = vmatprep.subr.bf16.mxu1 %v1745_v31 }
 0x2b4   : > { %v936_v46 = vpop.permute.xlu0 %935 }
 0x2b5   : > { %v941_v47 = vsel %vm811_vm3, %v936_v46, 0  ;;  %v1701_v46 = vld [vmem:[%s2104_s0] sm:$0xff]  }
 0x2b9   : > { %1625 = vmatmul.mubr.msk.bf16.vlgmr.msra.gmra.mrb[0].mxu1 %vm811_vm3, %v1949_v43 }
 0x2ba   : > { %1635 = vmatpush3.bf16.xpose.msra.mxu1 %v941_v47  ;;  %1636 = vmatprep.mubr.msk.bf16.mxu1 %vm1746_vm1, %v1745_v31 }
 0x2bb   : > { %1646 = vmatprep.subr.bf16.mxu1 %v1745_v31 }
 0x2c1   : > { %1637 = vmatmul.mubr.msk.bf16.vlgmr.msra.gmra.mrb[4].mxu1 %vm811_vm3, %v934_v48 }
 0x2c2   : > { %1650 = vmatprep.mubr.msk.bf16.mxu1 %vm1746_vm1, %v1745_v31  ;;  %1647 = vmatpush3.bf16.msra.mxu1 %v1701_v46 }
 0x2c3   : > { %1648 = vmatprep.subr.bf16.mxu1 %v1745_v31 }
 0x38c   : > { %v852_v49 = vpop.f32.mrb[0].mxu1 }
 0x38d   : > { %v859_v51 = vmul.f32 0.25, %v852_v49  ;;  %v1626_v52 = vpop.f32.mrb[1].mxu1  ;;  %v1702_v49 = vld [vmem:[%s2104_s0 + $0x8] sm:$0xff]  }
 0x38e   : > { %v855_v53 = vpop.f32.mrb[2].mxu1  ;;  %1649 = vmatpush3.bf16.msra.mxu1 %v1702_v49 }
 0x38f   : > { %v860_v55 = vmul.f32 0.25, %v855_v53  ;;  %v1627_v56 = vpop.f32.mrb[3].mxu1  ;;  %v861_v57 = vadd.f32 %v859_v51, %v805_v50  ;;  %1662 = vmatprep.subr.bf16.mxu1 %v1745_v31 }
 0x391   : > { %v863_v58 = vsel %vm811_vm3, %v861_v57, -inf  ;;  %v862_v59 = vadd.f32 %v860_v55, %v806_v54 }
 0x392   : > { %864 = vmax.xlane.f32.xlu1 %v863_v58 }
 0x393   : > { %v866_v60 = vsel %vm811_vm3, %v862_v59, -inf }
 0x394   : > { %867 = vmax.xlane.f32.xlu0 %v866_v60  ;;  %v977_v61 = vpop.f32.mrb[4].mxu1 }
 0x395   : > { %v984_v62 = vmul.f32 0.25, %v977_v61  ;;  %v1638_v63 = vpop.f32.mrb[5].mxu1 }
 0x396   : > { %v980_v0 = vpop.f32.mrb[6].mxu1  ;;  %v1567_v63 = vld [vmem:[%s2105_s27] ss:$0 sm:$0xff] }
 0x397   : > { %v985_v1 = vmul.f32 0.25, %v980_v0  ;;  %v1639_v2 = vpop.f32.mrb[7].mxu1  ;;  %v986_v3 = vadd.f32 %v984_v62, %v805_v50 }
 0x399   : > { %v988_v4 = vsel %vm811_vm3, %v986_v3, -inf  ;;  %v987_v5 = vadd.f32 %v985_v1, %v806_v54 }
 0x39a   : > { %989 = vmax.xlane.f32.xlu0 %v988_v4 }
 0x39b   : > { %v991_v6 = vsel %vm811_vm3, %v987_v5, -inf }
 0x39c   : > { %992 = vmax.xlane.f32.xlu1 %v991_v6 }
 0x41f   : > { %v865_v7 = vpop.xlane.xlu1 %864 }
 0x420   : > { %v869_v8 = vsub.f32 %v861_v57, %v865_v7 }
 0x421   : > { %v868_v9 = vpop.xlane.xlu0 %867 }
 0x422   : > { %v871_v10 = vmul.f32 1.442695, %v869_v8  ;;  %v870_v11 = vsub.f32 %v862_v59, %v868_v9 }
 0x424   : > { %1709 = vpow2.f32 %v871_v10  ;;  %v873_v12 = vmul.f32 1.442695, %v870_v11 }
 0x426   : > { %1711 = vpow2.f32 %v873_v12 }
 0x427   : > { %v990_v13 = vpop.xlane.xlu0 %989 }
 0x428   : > { %v994_v14 = vsub.f32 %v986_v3, %v990_v13 }
 0x429   : > { %v993_v15 = vpop.xlane.xlu1 %992 }
 0x42a   : > { %v996_v16 = vmul.f32 1.442695, %v994_v14  ;;  %v995_v17 = vsub.f32 %v987_v5, %v993_v15 }
 0x42c   : > { %1713 = vpow2.f32 %v996_v16  ;;  %v998_v18 = vmul.f32 1.442695, %v995_v17 }
 0x42e   : > { %v1710_v19 = vpop.eup %1709  ;;  %1715 = vpow2.f32 %v998_v18 }
 0x42f   : > { %v875_v20 = vsel %vm811_vm3, %v1710_v19, 0.0 }
 0x430   : > { %v1712_v21 = vpop.eup %1711  ;;  %876 = vadd.xlane.f32.xlu0 %v875_v20 }
 0x431   : > { %v878_v22 = vsel %vm811_vm3, %v1712_v21, 0.0 }
 0x432   : > { %879 = vadd.xlane.f32.xlu1 %v878_v22 }
 0x436   : > { %v1714_v23 = vpop.eup %1713 }
 0x437   : > { %v1000_v24 = vsel %vm811_vm3, %v1714_v23, 0.0 }
 0x438   : > { %v1716_v25 = vpop.eup %1715  ;;  %1001 = vadd.xlane.f32.xlu0 %v1000_v24 }
 0x439   : > { %v1003_v26 = vsel %vm811_vm3, %v1716_v25, 0.0 }
 0x43a   : > { %1004 = vadd.xlane.f32.xlu1 %v1003_v26 }
 0x44b   : > { %1011 = vrot.lane.b32.xlu1 %v1949_v43, %s1750_s30 }
 0x44e   : > { %886 = vrot.lane.b32.xlu0 %v1949_v43, %s1751_s29  ;;  %s2107_s29 = scalar_lea.vmem %s2077_s9, %s1850_s23 }
 0x4bd   : > { %v877_v27 = vpop.xlane.xlu0 %876 }
 0x4be   : > { %1717 = vrcp.f32 %v877_v27 }
 0x4bf   : > { %v880_v28 = vpop.xlane.xlu1 %879 }
 0x4c0   : > { %1719 = vrcp.f32 %v880_v28 }
 0x4c5   : > { %v1002_v29 = vpop.xlane.xlu0 %1001 }
 0x4c6   : > { %1721 = vrcp.f32 %v1002_v29 }
 0x4c7   : > { %v1005_v30 = vpop.xlane.xlu1 %1004 }
 0x4c8   : > { %v1718_v32 = vpop.eup %1717  ;;  %1723 = vrcp.f32 %v1005_v30 }
 0x4c9   : > { %v887_v35 = vpop.permute.xlu0 %886  ;;  %v883_v37 = vmul.f32 %v1718_v32, %v1710_v19  ;;  %v1704_v19 = vld [vmem:[%s1882_s4 + $0x8] sm:$0xff]  }
 0x4ca   : > { %v1720_v36 = vpop.eup %1719  ;;  %1629 = vmatpush3.bf16.msra.mxu0 %v887_v35  ;;  %v1572_v35 = vld [vmem:[%s2107_s29] ss:$0 sm:$0xff] }
 0x4cb   : > { %v884_v38 = vmul.f32 %v1720_v36, %v1712_v21  ;;  %1640 = vmatprep.subr.bf16.mxu0 %v1745_v31  ;;  %v1012_v40 = vpop.permute.xlu1 %1011 }
 0x4cd   : > { %v885_v39 = vpack.c.bf16 %v884_v38, %v883_v37 }
 0x4cf   : > { %1631 = vmatmul.mubr.msk.bf16.vlgmr.msra.gmra.mrb[4].mxu0 %vm811_vm3, %v885_v39 }
 0x4d0   : > { %v1722_v41 = vpop.eup %1721  ;;  %1641 = vmatpush3.bf16.msra.mxu0 %v1012_v40  ;;  %1642 = vmatprep.mubr.msk.bf16.mxu0 %vm1746_vm1, %v1745_v31  ;;  %v1705_v40 = vld [vmem:[%s1892_s21] sm:$0xff]  }
 0x4d1   : > { %1654 = vmatprep.subr.bf16.mxu0 %v1745_v31  ;;  %v1008_v43 = vmul.f32 %v1722_v41, %v1714_v23  ;;  %v1706_v41 = vld [vmem:[%s1892_s21 + $0x8] sm:$0xff]  }
 0x4d2   : > { %v1724_v42 = vpop.eup %1723 }
 0x4d3   : > { %v1009_v44 = vmul.f32 %v1724_v42, %v1716_v25  ;;  %v1707_v42 = vld [vmem:[%s1892_s21 + $0x10] sm:$0xff]  }
 0x4d5   : > { %v1010_v45 = vpack.c.bf16 %v1009_v44, %v1008_v43  ;;  %v1708_v43 = vld [vmem:[%s1892_s21 + $0x18] sm:$0xff]   ;;  %v1573_v44 = vld [vmem:[%s664_s6] ss:$0 sm:$0xff] }
 0x4d7   : > { %1643 = vmatmul.mubr.msk.bf16.vlgmr.msra.gmra.mrb[8].mxu0 %vm811_vm3, %v1010_v45 }
 0x4d8   : > { %1658 = vmatprep.mubr.msk.bf16.mxu0 %vm1746_vm1, %v1745_v31 }
 0x5a2   : > { %v926_v47 = vpop.f32.mrb[4].mxu0 }
 0x5a3   : > { %v1632_v48 = vpop.f32.mrb[5].mxu0 }
 0x5a4   : > { %v929_v50 = vpop.f32.mrb[6].mxu0 }
 0x5a5   : > { %v1633_v51 = vpop.f32.mrb[7].mxu0 }
 0x5aa   : > { %v1051_v52 = vpop.f32.mrb[8].mxu0 }
 0x5ab   : > { %v1644_v53 = vpop.f32.mrb[9].mxu0 }
 0x5ac   : > { %v1054_v54 = vpop.f32.mrb[10].mxu0 }
 0x5ad   : > { %v1694_v55 = vpack.i.bf16 %v1054_v54, %v1051_v52  ;;  %v1645_v56 = vpop.f32.mrb[11].mxu0 }
 0x5af   : > { %1695 = vrot.lane.b32.xlu1 %v1694_v55, %s1752_s17 }
 0x621   : > { %v1696_v57 = vpop.permute.xlu1 %1695 }
 0x622   : > { %v1698_v58 = vunpack.i.h.bf16 %v1696_v57  ;;  %v1697_v59 = vunpack.i.l.bf16 %v1696_v57 }
 0x624   : > { %v1067_v60 = vsel %vm811_vm3, %v929_v50, %v1698_v58  ;;  %v1066_v61 = vsel %vm811_vm3, %v926_v47, %v1697_v59 }
 0x625   : > { %v1072_v62 = vpack.c.bf16 %v1067_v60, %v1066_v61 }
 0x627   : > { %1651 = vmatmul.mubr.msk.bf16.vlgmr.msra.gmra.mrb[8].mxu1 %vm760_vm2, %v1072_v62 }
 0x628   : > { %1670 = vmatprep.mubr.msk.bf16.mxu1 %vm1746_vm1, %v1745_v31  ;;  %1663 = vmatpush3.bf16.msra.mxu1 %v1705_v40 }
 0x629   : > { %1664 = vmatprep.subr.bf16.mxu1 %v1745_v31 }
 0x62c   : > { %1665 = vmatpush3.bf16.msra.mxu1 %v1706_v41 }
 0x62d   : > { %1666 = vmatprep.subr.bf16.mxu1 %v1745_v31 }
 0x630   : > { %1667 = vmatpush3.bf16.msra.mxu1 %v1707_v42 }
 0x631   : > { %1668 = vmatprep.subr.bf16.mxu1 %v1745_v31 }
 0x634   : > { %1669 = vmatpush3.bf16.msra.mxu1 %v1708_v43 }
 0x6fa   : > { %v1129_v0 = vpop.f32.mrb[8].mxu1 }
 0x6fb   : > { %v1130_v1 = vadd.f32 %v1567_v63, %v1129_v0  ;;  %v1652_v2 = vpop.f32.mrb[9].mxu1 }
 0x6fc   : > { %v1132_v3 = vpop.f32.mrb[10].mxu1 }
 0x6fd   : > { %v1133_v4 = vadd.f32 %v1567_v63, %v1132_v3  ;;  %v1653_v5 = vpop.f32.mrb[11].mxu1  ;;  %v1136_v6 = vadd.f32 %v1130_v1, %v1931_v33 }
 0x6fe   : > { %v1577_v5 = vld [vmem:[%s672_s25] ss:$0 sm:$0xff] }
 0x6ff   : > { %v1140_v7 = vsel %vm760_vm2, %v1136_v6, 0.0  ;;  %v1137_v8 = vadd.f32 %v1133_v4, %v1933_v34  ;;  %v1703_v34 = vld [vmem:[%s1882_s4] sm:$0xff]   ;;  %s2106_s4 = scalar_lea.vmem %s2076_s8, %s1850_s23 }
 0x700   : > { %1141 = vadd.xlane.f32.xlu0 %v1140_v7  ;;  %1655 = vmatpush3.bf16.msra.mxu0 %v1703_v34  ;;  %v1571_v28 = vld [vmem:[%s2106_s4] ss:$0 sm:$0xff] }
 0x701   : > { %v1143_v9 = vsel %vm760_vm2, %v1137_v8, 0.0  ;;  %1656 = vmatprep.subr.bf16.mxu0 %v1745_v31 }
 0x702   : > { %1144 = vadd.xlane.f32.xlu1 %v1143_v9 }
 0x704   : > { %1657 = vmatpush3.bf16.msra.mxu0 %v1704_v19 }
 0x78d   : > { %v1142_v10 = vpop.xlane.xlu0 %1141 }
 0x78e   : > { %v1147_v11 = vmul.f32 0.03125, %v1142_v10 }
 0x78f   : > { %v1145_v12 = vpop.xlane.xlu1 %1144 }
 0x790   : > { %v1149_v13 = vsub.f32 %v1136_v6, %v1147_v11  ;;  %v1148_v14 = vmul.f32 0.03125, %v1145_v12 }
 0x792   : > { %v1150_v15 = vsub.f32 %v1137_v8, %v1148_v14  ;;  %v1151_v16 = vmul.f32 %v1149_v13, %v1149_v13 }
 0x794   : > { %v1153_v17 = vsel %vm760_vm2, %v1151_v16, 0.0  ;;  %v1152_v33 = vmul.f32 %v1150_v15, %v1150_v15 }
 0x795   : > { %1154 = vadd.xlane.f32.xlu0 %v1153_v17 }
 0x796   : > { %v1156_v18 = vsel %vm760_vm2, %v1152_v33, 0.0 }
 0x799   : > { %1157 = vadd.xlane.f32.xlu0 %v1156_v18 }
 0x822   : > { %v1155_v20 = vpop.xlane.xlu0 %1154 }
 0x823   : > { %v1159_v21 = vmul.f32 0.03125, %v1155_v20 }
 0x825   : > { %v1161_v22 = vadd.f32 1e-12, %v1159_v21 }
 0x826   : > { %v1158_v23 = vpop.xlane.xlu0 %1157 }
 0x827   : > { %1725 = vrsqrt.f32 %v1161_v22  ;;  %v1160_v24 = vmul.f32 0.03125, %v1158_v23 }
 0x829   : > { %v1162_v25 = vadd.f32 1e-12, %v1160_v24 }
 0x82b   : > { %1727 = vrsqrt.f32 %v1162_v25 }
 0x831   : > { %v1726_v26 = vpop.eup %1725 }
 0x832   : > { %v1165_v27 = vmul.f32 %v1726_v26, %v1149_v13 }
 0x834   : > { %v1173_v30 = vmul.f32 %v1571_v28, %v1165_v27 }
 0x835   : > { %v1728_v29 = vpop.eup %1727 }
 0x836   : > { %v1166_v32 = vmul.f32 %v1728_v29, %v1150_v15  ;;  %v1181_v37 = vadd.f32 %v1572_v35, %v1173_v30 }
 0x838   : > { %v1174_v36 = vmul.f32 %v1571_v28, %v1166_v32  ;;  %v1583_v32 = vld [vmem:[%s675_s28] ss:$0 sm:$0xff] }
 0x83a   : > { %v1182_v38 = vadd.f32 %v1572_v35, %v1174_v36 }
 0x83c   : > { %v1187_v39 = vpack.c.bf16 %v1182_v38, %v1181_v37 }
 0x83e   : > { %1659 = vmatmul.mubr.msk.bf16.vlgmr.msra.gmra.mrb[12].mxu0 %vm760_vm2, %v1187_v39 }
 0x911   : > { %v1244_v45 = vpop.f32.mrb[12].mxu0 }
 0x912   : > { %v1245_v46 = vadd.f32 %v1573_v44, %v1244_v45  ;;  %v1660_v47 = vpop.f32.mrb[13].mxu0 }
 0x913   : > { %v1247_v48 = vpop.f32.mrb[14].mxu0 }
 0x914   : > { %v1253_v49 = vmul.f32 0.044715, %v1245_v46  ;;  %v1248_v50 = vadd.f32 %v1573_v44, %v1247_v48  ;;  %v1661_v51 = vpop.f32.mrb[15].mxu0  ;;  %v1251_v63 = vmul.f32 0.5, %v1245_v46 }
 0x916   : > { %v1255_v52 = vmul.f32 %v1253_v49, %v1245_v46  ;;  %v1254_v53 = vmul.f32 0.044715, %v1248_v50  ;;  %v1252_v0 = vmul.f32 0.5, %v1248_v50 }
 0x918   : > { %v1257_v54 = vmul.f32 %v1255_v52, %v1245_v46  ;;  %v1256_v55 = vmul.f32 %v1254_v53, %v1248_v50 }
 0x91a   : > { %v1259_v56 = vadd.f32 %v1257_v54, %v1245_v46  ;;  %v1258_v57 = vmul.f32 %v1256_v55, %v1248_v50 }
 0x91c   : > { %v1261_v31 = vmul.f32 0.7978846, %v1259_v56  ;;  %v1260_v58 = vadd.f32 %v1258_v57, %v1248_v50 }
 0x91e   : > { %1729 = vtanh.f32 %v1261_v31  ;;  %v1262_v59 = vmul.f32 0.7978846, %v1260_v58 }
 0x920   : > { %1731 = vtanh.f32 %v1262_v59 }
 0x928   : > { %v1730_v60 = vpop.eup %1729 }
 0x929   : > { %v1265_v61 = vadd.f32 1.0, %v1730_v60 }
 0x92a   : > { %v1732_v62 = vpop.eup %1731 }
 0x92b   : > { %v1266_v1 = vadd.f32 1.0, %v1732_v62  ;;  %v1267_v2 = vmul.f32 %v1265_v61, %v1251_v63 }
 0x92d   : > { %v1268_v3 = vmul.f32 %v1266_v1, %v1252_v0 }
 0x92f   : > { %v1277_v4 = vpack.c.bf16 %v1268_v3, %v1267_v2 }
 0x931   : > { %1671 = vmatmul.mubr.msk.bf16.vlgmr.msra.gmra.mrb[12].mxu1 %vm1309_vm4, %v1277_v4 }
 0xa04   : > { %v1347_v6 = vpop.f32.mrb[12].mxu1 }
 0xa05   : > { %v1348_v7 = vadd.f32 %v1577_v5, %v1347_v6  ;;  %v1672_v8 = vpop.f32.mrb[13].mxu1 }
 0xa06   : > { %v1350_v9 = vpop.f32.mrb[14].mxu1 }
 0xa07   : > { %v1351_v10 = vadd.f32 %v1577_v5, %v1350_v9  ;;  %v1673_v11 = vpop.f32.mrb[15].mxu1  ;;  %v1354_v12 = vadd.f32 %v1348_v7, %v1181_v37  ;;  %v1584_v37 = vld [vmem:[%s678_s3] ss:$0 sm:$0xff] }
 0xa09   : > { %v1358_v13 = vsel %vm760_vm2, %v1354_v12, 0.0  ;;  %v1355_v14 = vadd.f32 %v1351_v10, %v1182_v38 }
 0xa0a   : > { %1359 = vadd.xlane.f32.xlu1 %v1358_v13 }
 0xa0b   : > { %v1361_v15 = vsel %vm760_vm2, %v1355_v14, 0.0 }
 0xa0c   : > { %1362 = vadd.xlane.f32.xlu0 %v1361_v15 }
 0xa97   : > { %v1360_v16 = vpop.xlane.xlu1 %1359 }
 0xa98   : > { %v1364_v17 = vmul.f32 0.03125, %v1360_v16 }
 0xa99   : > { %v1363_v33 = vpop.xlane.xlu0 %1362 }
 0xa9a   : > { %v1366_v18 = vsub.f32 %v1354_v12, %v1364_v17  ;;  %v1365_v34 = vmul.f32 0.03125, %v1363_v33 }
 0xa9c   : > { %v1367_v19 = vsub.f32 %v1355_v14, %v1365_v34  ;;  %v1368_v20 = vmul.f32 %v1366_v18, %v1366_v18 }
 0xa9e   : > { %v1370_v21 = vsel %vm760_vm2, %v1368_v20, 0.0  ;;  %v1369_v22 = vmul.f32 %v1367_v19, %v1367_v19 }
 0xa9f   : > { %1371 = vadd.xlane.f32.xlu1 %v1370_v21 }
 0xaa0   : > { %v1373_v23 = vsel %vm760_vm2, %v1369_v22, 0.0 }
 0xaa1   : > { %1374 = vadd.xlane.f32.xlu0 %v1373_v23 }
 0xb2c   : > { %v1372_v24 = vpop.xlane.xlu1 %1371 }
 0xb2d   : > { %v1376_v25 = vmul.f32 0.03125, %v1372_v24 }
 0xb2e   : > { %v1375_v26 = vpop.xlane.xlu0 %1374 }
 0xb2f   : > { %v1378_v27 = vadd.f32 1e-12, %v1376_v25  ;;  %v1377_v28 = vmul.f32 0.03125, %v1375_v26 }
 0xb31   : > { %1733 = vrsqrt.f32 %v1378_v27  ;;  %v1379_v29 = vadd.f32 1e-12, %v1377_v28 }
 0xb33   : > { %1735 = vrsqrt.f32 %v1379_v29 }
 0xb3b   : > { %v1734_v30 = vpop.eup %1733 }
 0xb3c   : > { %v1382_v35 = vmul.f32 %v1734_v30, %v1366_v18 }
 0xb3d   : > { %v1736_v36 = vpop.eup %1735 }
 0xb3e   : > { %v1390_v38 = vmul.f32 %v1583_v32, %v1382_v35  ;;  %v1383_v39 = vmul.f32 %v1736_v36, %v1367_v19  ;;  %1405 = sbr.rel (%p1585_p5) target bundleno = 2885 (0xb45), region = 92 }
 0xb40   : > { %v1398_v40 = vadd.f32 %v1584_v37, %v1390_v38  ;;  %v1391_v41 = vmul.f32 %v1583_v32, %v1383_v39 }
 0xb42   : > { %1400 = vst.msk [vmem:[#allocation2] sm:$0xff] %vm760_vm2, %v1398_v40  ;;  %v1399_v42 = vadd.f32 %v1584_v37, %v1391_v41  ;;  %1406 = vst.msk [vmem:[%s2108_s26] sm:$0xff] (!%p1585_p5), %vm760_vm2, %v1398_v40 }
 0xb44   : > { %1401 = vst.msk [vmem:[#allocation2 + $0x8] sm:$0xff] %vm760_vm2, %v1399_v42  ;;  %1407 = vst.msk [vmem:[%s2108_s26 + $0x8] sm:$0xff] (!%p1585_p5), %vm760_vm2, %v1399_v42 }
 0xb45 PF: > { %s2109_s4 = sld [smem:[#allocation3_spill]] }
 0xb4b   : > { %s26_s21 = sadd.s32 1, %s2109_s4  }
 0xb4c   : > { %p23_p6 = scmp.ge.s32.totalorder %s26_s21, 4  }
 0xb4e   :  { %25 = sbr.rel (!%p23_p6) target bundleno = 7 (0x7), region = 151 }

</bundles_post_ra>
